<compile_context>
chip_gen: v5e
topology: v5e:2x2
jax: 0.10.0
libtpu: 0.0.40
codegen_flags: <defaults>
</compile_context>

<pallas_src>
import jax
import jax.numpy as jnp
from jax import lax
from jax.experimental import pallas as pl
from jax.experimental.pallas import tpu as pltpu

B, S, D, V = 8, 50, 48, 39
R = B * S  # 400 flattened (batch, position) rows


def _pos_embed_kernel(tok_ref, pos_ref, table_ref, pe_ref, out_ref):
    # tok_ref:   (R, 1)  int32   -- token id per flattened row (row = b*S + s)
    # pos_ref:   (R, 1)  int32   -- position id s per flattened row
    # table_ref: (V, D)  float32 -- embedding table
    # pe_ref:    (S, D)  float32 -- positional-encoding table
    # out_ref:   (R, D)  float32
    tok = tok_ref[...]                                             # (R, 1)
    pos = pos_ref[...]                                             # (R, 1)

    # Token gather as a standard-orientation one-hot MXU matmul:
    # one-hot has rows on sublanes, vocab on lanes.
    vocab_iota = lax.broadcasted_iota(jnp.int32, (R, V), 1)        # (R, V)
    tok_onehot = (tok == vocab_iota).astype(jnp.float32)           # (R, V)
    emb = jnp.dot(tok_onehot, table_ref[...],
                  preferred_element_type=jnp.float32)              # (R, D)

    # Positional-encoding broadcast over batch, also as a one-hot MXU matmul
    # (selects pe row s for each flattened row) -- avoids any in-kernel
    # tile/reshape across (8,128) tiles.
    pos_iota = lax.broadcasted_iota(jnp.int32, (R, S), 1)          # (R, S)
    pos_onehot = (pos == pos_iota).astype(jnp.float32)             # (R, S)
    pos_emb = jnp.dot(pos_onehot, pe_ref[...],
                      preferred_element_type=jnp.float32)          # (R, D)

    out_ref[...] = emb + pos_emb


def position_embedding(x_tokens, embed_table, pe):
    """x_tokens: (B, S) int; embed_table: (V, D) f32; pe: (1, S, D) f32 -> (B, S, D) f32."""
    b, s = x_tokens.shape
    d = embed_table.shape[1]
    # Wrapper-side (free, row-major) reshapes; nothing is reshaped in-kernel.
    tok_col = x_tokens.reshape(b * s, 1).astype(jnp.int32)          # (R, 1)
    pos_col = jnp.tile(jnp.arange(s, dtype=jnp.int32), b).reshape(b * s, 1)
    pe_sd = pe.reshape(s, d)                                        # (S, D)

    out_flat = pl.pallas_call(
        _pos_embed_kernel,
        out_shape=jax.ShapeDtypeStruct((b * s, d), jnp.float32),
        # Single block, no grid: every operand lives fully in VMEM, DMA'd once.
        in_specs=[
            pl.BlockSpec(memory_space=pltpu.MemorySpace.VMEM),  # token ids
            pl.BlockSpec(memory_space=pltpu.MemorySpace.VMEM),  # position ids
            pl.BlockSpec(memory_space=pltpu.MemorySpace.VMEM),  # embedding table
            pl.BlockSpec(memory_space=pltpu.MemorySpace.VMEM),  # pe table
        ],
        out_specs=pl.BlockSpec(memory_space=pltpu.MemorySpace.VMEM),
    )(tok_col, pos_col, embed_table, pe_sd)

    return out_flat.reshape(b, s, d)


def _make_pe():
    # Matches the PyTorch module exactly:
    # pe[i, j] = sin(i / 10000**(j/D)) if j even else cos(i / 10000**(j/D))
    pos = jnp.arange(S, dtype=jnp.float32)[:, None]            # (S, 1)
    j = jnp.arange(D, dtype=jnp.float32)[None, :]              # (1, D)
    angle = pos / (10000.0 ** (j / float(D)))                  # (S, D)
    even = (jnp.arange(D)[None, :] % 2) == 0
    pe = jnp.where(even, jnp.sin(angle), jnp.cos(angle))
    return pe[None, :, :].astype(jnp.float32)                  # (1, S, D)


if __name__ == "__main__":
    key = jax.random.PRNGKey(0)
    k_tok, k_w = jax.random.split(key)

    # Deterministic synthetic inputs / parameters at the module's shapes.
    x = jax.random.randint(k_tok, (B, S), 0, V, dtype=jnp.int32)
    embed_table = (0.1 * jax.random.normal(k_w, (V, D))).astype(jnp.float32)
    pe = _make_pe()

    out = position_embedding(x, embed_table, pe)
    out = jax.block_until_ready(out)

    # Pure-JAX reference (same semantics as nn.Embedding(x) + pe).
    ref = embed_table[x] + pe
    assert out.shape == (B, S, D)
    assert jnp.allclose(out, ref, atol=1e-5, rtol=1e-5), "mismatch vs reference"

    print("KERNEL_OK")
</pallas_src>

<mosaic_0001>
module attributes {stable_mosaic.version = 11 : i64} {
  func.func @_pos_embed_kernel(%arg0: memref<400x1xi32, #tpu.memory_space<vmem>>, %arg1: memref<400x1xi32, #tpu.memory_space<vmem>>, %arg2: memref<39x48xf32, #tpu.memory_space<vmem>>, %arg3: memref<50x48xf32, #tpu.memory_space<vmem>>, %arg4: memref<400x48xf32, #tpu.memory_space<vmem>>) attributes {dimension_semantics = [], scalar_prefetch = 0 : i64, scratch_operands = 0 : i64, tpu.core_type = #tpu.core_type<tc>} {
    %c0 = arith.constant 0 : index
    %c0_0 = arith.constant 0 : index
    %0 = vector.load %arg0[%c0, %c0_0] : memref<400x1xi32, #tpu.memory_space<vmem>>, vector<400x1xi32>
    %c0_1 = arith.constant 0 : index
    %c0_2 = arith.constant 0 : index
    %1 = vector.load %arg1[%c0_1, %c0_2] : memref<400x1xi32, #tpu.memory_space<vmem>>, vector<400x1xi32>
    %2 = tpu.iota {dimensions = array<i32: 1>} : vector<400x39xi32>
    %3 = vector.broadcast %0 : vector<400x1xi32> to vector<400x39xi32>
    %4 = arith.cmpi eq, %3, %2 : vector<400x39xi32>
    %5 = arith.extui %4 : vector<400x39xi1> to vector<400x39xi32>
    %6 = arith.sitofp %5 : vector<400x39xi32> to vector<400x39xf32>
    %c0_3 = arith.constant 0 : index
    %c0_4 = arith.constant 0 : index
    %7 = vector.load %arg2[%c0_3, %c0_4] : memref<39x48xf32, #tpu.memory_space<vmem>>, vector<39x48xf32>
    %cst = arith.constant dense<0.000000e+00> : vector<400x48xf32>
    %8 = tpu.matmul %6, %7, %cst {dimension_numbers = #tpu.dot_dimension_numbers<[1], [0], [0], [1], [0, 0, 1, 1], [], []>} : vector<400x39xf32>, vector<39x48xf32>, vector<400x48xf32> -> vector<400x48xf32>
    %9 = tpu.iota {dimensions = array<i32: 1>} : vector<400x50xi32>
    %10 = vector.broadcast %1 : vector<400x1xi32> to vector<400x50xi32>
    %11 = arith.cmpi eq, %10, %9 : vector<400x50xi32>
    %12 = arith.extui %11 : vector<400x50xi1> to vector<400x50xi32>
    %13 = arith.sitofp %12 : vector<400x50xi32> to vector<400x50xf32>
    %c0_5 = arith.constant 0 : index
    %c0_6 = arith.constant 0 : index
    %14 = vector.load %arg3[%c0_5, %c0_6] : memref<50x48xf32, #tpu.memory_space<vmem>>, vector<50x48xf32>
    %cst_7 = arith.constant dense<0.000000e+00> : vector<400x48xf32>
    %15 = tpu.matmul %13, %14, %cst_7 {dimension_numbers = #tpu.dot_dimension_numbers<[1], [0], [0], [1], [0, 0, 1, 1], [], []>} : vector<400x50xf32>, vector<50x48xf32>, vector<400x48xf32> -> vector<400x48xf32>
    %16 = arith.addf %8, %15 : vector<400x48xf32>
    %c0_8 = arith.constant 0 : index
    %c0_9 = arith.constant 0 : index
    %17 = vector.load %arg4[%c0_8, %c0_9] : memref<400x48xf32, #tpu.memory_space<vmem>>, vector<400x48xf32>
    tpu.vector_store %arg4[%c0_8, %c0_9], %16 {strides = array<i32>} : memref<400x48xf32, #tpu.memory_space<vmem>>, vector<400x48xf32>,
    return
  }
}

</mosaic_0001>

<bundles_post_ra>
// kernel: tpu_custom_call.1
= control target key start
LH: loop header
LB: loop body
LE: loop exit
PB: predicated region body
PF: predicated region fallthrough
CT: control target
= control target key end

     0   :  { %v1649_v0 = vmov 0   ;;  %vm1204_vm0 = vcmask 1046528   ;;  %v117_v51 = vlaneseq  ;;  %vm1053_vm1 = vcmask 318464   ;;  %s2706_s0 = inlined_call_operand.vmem [shape: s32[400,1], index: 0, kind: input, shape index: {}]   ;;  %s2707_s2 = inlined_call_operand.vmem [shape: f32[39,48], index: 2, kind: input, shape index: {}]   ;;  %s2708_s1 = inlined_call_operand.vmem [shape: s32[400,1], index: 1, kind: input, shape index: {}]   ;;  %s2709_s3 = inlined_call_operand.vmem [shape: f32[50,48], index: 3, kind: input, shape index: {}]   ;;  %s2710_s4 = inlined_call_operand.vmem [shape: f32[400,48], index: 4, kind: output, shape index: {}]  }
   0x1   :  { %1648 = vset.pattern.permute.xlu2 %v1649_v0  ;;  %1647 = vset.pattern.permute.xlu1 %v1649_v0  ;;  %v21_v1 = vld [vmem:[%s2706_s0 + $0x20] sm:$0xff]  ;;  %v19_v2 = vld [vmem:[%s2706_s0 + $0x10] sm:$0xff]  ;;  %v22_v4 = vld [vmem:[%s2706_s0 + $0x28] sm:$0xff]  ;;  %v1650_v59 = vmov 0.0   ;;  %vm882_vm11 = vcmask 1041408  }
   0x2   :  { %v17_v3 = vld [vmem:[%s2706_s0] sm:$0xff]  ;;  %1646 = vset.pattern.permute.xlu0 %v1649_v0  ;;  %132 = vperm.xlu2 %1648, %v21_v1   ;;  %v20_v5 = vld [vmem:[%s2706_s0 + $0x18] sm:$0xff]  ;;  %v18_v6 = vld [vmem:[%s2706_s0 + $0x8] sm:$0xff]  ;;  %v1832_v55 = vand.u32 127, %v117_v51 }
   0x3   :  { %126 = vperm.xlu1 %1647, %v19_v2   ;;  %120 = vperm.xlu0 %1646, %v17_v3   ;;  %v25_v7 = vld [vmem:[%s2706_s0 + $0x40] sm:$0xff]  ;;  %v24_v8 = vld [vmem:[%s2706_s0 + $0x38] sm:$0xff]  ;;  %v23_v9 = vld [vmem:[%s2706_s0 + $0x30] sm:$0xff] }
   0x4   :  { %v28_v10 = vld [vmem:[%s2706_s0 + $0x58] sm:$0xff]  ;;  %v27_v11 = vld [vmem:[%s2706_s0 + $0x50] sm:$0xff]  ;;  %v26_v12 = vld [vmem:[%s2706_s0 + $0x48] sm:$0xff] }
   0x5   :  { %v31_v13 = vld [vmem:[%s2706_s0 + $0x70] sm:$0xff]  ;;  %v30_v14 = vld [vmem:[%s2706_s0 + $0x68] sm:$0xff]  ;;  %v29_v15 = vld [vmem:[%s2706_s0 + $0x60] sm:$0xff] }
   0x6   :  { %v34_v16 = vld [vmem:[%s2706_s0 + $0x88] sm:$0xff]  ;;  %v33_v17 = vld [vmem:[%s2706_s0 + $0x80] sm:$0xff]  ;;  %v32_v18 = vld [vmem:[%s2706_s0 + $0x78] sm:$0xff] }
   0x7   :  { %v37_v19 = vld [vmem:[%s2706_s0 + $0xa0] sm:$0xff]  ;;  %v36_v20 = vld [vmem:[%s2706_s0 + $0x98] sm:$0xff]  ;;  %v35_v21 = vld [vmem:[%s2706_s0 + $0x90] sm:$0xff] }
   0x8   :  { %v40_v22 = vld [vmem:[%s2706_s0 + $0xb8] sm:$0xff]  ;;  %v39_v23 = vld [vmem:[%s2706_s0 + $0xb0] sm:$0xff]  ;;  %v38_v24 = vld [vmem:[%s2706_s0 + $0xa8] sm:$0xff] }
   0x9   :  { %v43_v25 = vld [vmem:[%s2706_s0 + $0xd0] sm:$0xff]  ;;  %v42_v26 = vld [vmem:[%s2706_s0 + $0xc8] sm:$0xff]  ;;  %v41_v27 = vld [vmem:[%s2706_s0 + $0xc0] sm:$0xff] }
   0xa   :  { %135 = vperm.xlu2 %1648, %v22_v4   ;;  %v46_v28 = vld [vmem:[%s2706_s0 + $0xe8] sm:$0xff]  ;;  %v45_v29 = vld [vmem:[%s2706_s0 + $0xe0] sm:$0xff]  ;;  %v44_v30 = vld [vmem:[%s2706_s0 + $0xd8] sm:$0xff] }
   0xb   :  { %129 = vperm.xlu1 %1647, %v20_v5   ;;  %123 = vperm.xlu0 %1646, %v18_v6   ;;  %v423_v31 = vld [vmem:[%s2707_s2 + $0x20] sm:$0x7f]  ;;  %v422_v32 = vld [vmem:[%s2707_s2 + $0x18] sm:$0xff]  ;;  %v47_v35 = vld [vmem:[%s2706_s0 + $0xf0] sm:$0xff] }
   0xc   :  { %v49_v33 = vld [vmem:[%s2706_s0 + $0x100] sm:$0xff]  ;;  %1581 = vmatpush.msk.msra.mxu1 %vm1204_vm0, %v423_v31  ;;  %1639 = vmatpush.msk.msra.mxu3 %vm1204_vm0, %v423_v31  ;;  %v48_v34 = vld [vmem:[%s2706_s0 + $0xf8] sm:$0xff]  ;;  %v421_v36 = vld [vmem:[%s2707_s2 + $0x10] sm:$0xff] }
   0xd   :  { %v420_v37 = vld [vmem:[%s2707_s2 + $0x8] sm:$0xff]  ;;  %v419_v38 = vld [vmem:[%s2707_s2] sm:$0xff]  ;;  %v52_v39 = vld [vmem:[%s2706_s0 + $0x118] sm:$0xff] }
   0xe   :  { %1220 = vmatpush.msra.mxu1 %v422_v32  ;;  %1640 = vmatpush.msra.mxu3 %v422_v32  ;;  %v51_v40 = vld [vmem:[%s2706_s0 + $0x110] sm:$0xff]  ;;  %v50_v41 = vld [vmem:[%s2706_s0 + $0x108] sm:$0xff]  ;;  %v53_v45 = vld [vmem:[%s2706_s0 + $0x120] sm:$0xff] }
   0xf   :  { %v55_v43 = vld [vmem:[%s2706_s0 + $0x130] sm:$0xff]  ;;  %v54_v44 = vld [vmem:[%s2706_s0 + $0x128] sm:$0xff]  ;;  %v67_v48 = vld [vmem:[%s2708_s1] sm:$0xff] }
  0x10   :  { %1221 = vmatpush.msra.mxu1 %v421_v36  ;;  %1641 = vmatpush.msra.mxu3 %v421_v36  ;;  %v93_v47 = vld [vmem:[%s2708_s1 + $0xd0] sm:$0xff]  ;;  %v92_v49 = vld [vmem:[%s2708_s1 + $0xc8] sm:$0xff]  ;;  %v94_v53 = vld [vmem:[%s2708_s1 + $0xd8] sm:$0xff] }
  0x11   :  { %v69_v52 = vld [vmem:[%s2708_s1 + $0x10] sm:$0xff]  ;;  %v68_v54 = vld [vmem:[%s2708_s1 + $0x8] sm:$0xff]  ;;  %v70_v62 = vld [vmem:[%s2708_s1 + $0x18] sm:$0xff] }
  0x12   :  { %144 = vperm.xlu2 %1648, %v25_v7   ;;  %1222 = vmatpush.msra.mxu1 %v420_v37  ;;  %v96_v61 = vld [vmem:[%s2708_s1 + $0xe8] sm:$0xff]  ;;  %v95_v63 = vld [vmem:[%s2708_s1 + $0xe0] sm:$0xff]  ;;  %v97_v5 = vld [vmem:[%s2708_s1 + $0xf0] sm:$0xff] }
  0x13   :  { %141 = vperm.xlu1 %1647, %v24_v8   ;;  %138 = vperm.xlu0 %1646, %v23_v9   ;;  %v72_v4 = vld [vmem:[%s2708_s1 + $0x28] sm:$0xff]  ;;  %v71_v6 = vld [vmem:[%s2708_s1 + $0x20] sm:$0xff] }
  0x14   :  { %1642 = vmatpush.msra.mxu3 %v420_v37  ;;  %1223 = vmatpush.msra.mxu1 %v419_v38  ;;  %v729_v51 = vld [vmem:[%s2709_s3 + $0x28] sm:$0xff] }
  0x16   :  { %1643 = vmatpush.msra.mxu3 %v419_v38 }
  0x1a   :  { %153 = vperm.xlu2 %1648, %v28_v10  }
  0x1b   :  { %150 = vperm.xlu1 %1647, %v27_v11   ;;  %147 = vperm.xlu0 %1646, %v26_v12   ;;  %v99_v11 = vld [vmem:[%s2708_s1 + $0x100] sm:$0xff]  ;;  %v73_v12 = vld [vmem:[%s2708_s1 + $0x30] sm:$0xff] }
  0x22   :  { %162 = vperm.xlu2 %1648, %v31_v13   ;;  %v98_v13 = vld [vmem:[%s2708_s1 + $0xf8] sm:$0xff] }
  0x23   :  { %159 = vperm.xlu1 %1647, %v30_v14   ;;  %156 = vperm.xlu0 %1646, %v29_v15  }
  0x2a   :  { %171 = vperm.xlu2 %1648, %v34_v16  }
  0x2b   :  { %168 = vperm.xlu1 %1647, %v33_v17   ;;  %165 = vperm.xlu0 %1646, %v32_v18   ;;  %v75_v18 = vld [vmem:[%s2708_s1 + $0x40] sm:$0xff] }
  0x32   :  { %180 = vperm.xlu2 %1648, %v37_v19   ;;  %v100_v19 = vld [vmem:[%s2708_s1 + $0x108] sm:$0xff] }
  0x33   :  { %177 = vperm.xlu1 %1647, %v36_v20   ;;  %174 = vperm.xlu0 %1646, %v35_v21   ;;  %v74_v20 = vld [vmem:[%s2708_s1 + $0x38] sm:$0xff] }
  0x3a   :  { %189 = vperm.xlu2 %1648, %v40_v22  }
  0x3b   :  { %186 = vperm.xlu1 %1647, %v39_v23   ;;  %183 = vperm.xlu0 %1646, %v38_v24  }
  0x42   :  { %198 = vperm.xlu2 %1648, %v43_v25   ;;  %v102_v25 = vld [vmem:[%s2708_s1 + $0x118] sm:$0xff] }
  0x43   :  { %195 = vperm.xlu1 %1647, %v42_v26   ;;  %192 = vperm.xlu0 %1646, %v41_v27   ;;  %v76_v26 = vld [vmem:[%s2708_s1 + $0x48] sm:$0xff]  ;;  %v101_v27 = vld [vmem:[%s2708_s1 + $0x110] sm:$0xff] }
  0x4a   :  { %207 = vperm.xlu2 %1648, %v46_v28  }
  0x4b   :  { %204 = vperm.xlu1 %1647, %v45_v29   ;;  %201 = vperm.xlu0 %1646, %v44_v30  }
  0x52   :  { %216 = vperm.xlu2 %1648, %v49_v33   ;;  %v78_v33 = vld [vmem:[%s2708_s1 + $0x58] sm:$0xff] }
  0x53   :  { %213 = vperm.xlu1 %1647, %v48_v34   ;;  %210 = vperm.xlu0 %1646, %v47_v35   ;;  %v103_v34 = vld [vmem:[%s2708_s1 + $0x120] sm:$0xff]  ;;  %v77_v35 = vld [vmem:[%s2708_s1 + $0x50] sm:$0xff] }
  0x5a   :  { %225 = vperm.xlu2 %1648, %v52_v39   ;;  %v105_v39 = vld [vmem:[%s2708_s1 + $0x130] sm:$0xff] }
  0x5b   :  { %222 = vperm.xlu1 %1647, %v51_v40   ;;  %219 = vperm.xlu0 %1646, %v50_v41   ;;  %v79_v40 = vld [vmem:[%s2708_s1 + $0x60] sm:$0xff]  ;;  %v104_v41 = vld [vmem:[%s2708_s1 + $0x128] sm:$0xff] }
  0x5c   :  { %v1799_v42 = vpop.permute.xlu2 %132 }
  0x5d   :  { %vm273_vm6 = vcmp.eq.s32.totalorder %v1799_v42, %v1832_v55 }
  0x5e   :  { %v1434_v24 = vsel %vm273_vm6, 1.0, %v1650_v59 }
  0x62   :  { %234 = vperm.xlu2 %1648, %v55_v43  }
  0x63   :  { %231 = vperm.xlu1 %1647, %v54_v44   ;;  %228 = vperm.xlu0 %1646, %v53_v45   ;;  %v106_v45 = vld [vmem:[%s2708_s1 + $0x138] sm:$0xff] }
  0x64   :  { %v1810_v46 = vpop.permute.xlu2 %135 }
  0x65   :  { %vm274_vm7 = vcmp.eq.s32.totalorder %v1810_v46, %v1832_v55 }
  0x66   :  { %v1435_v32 = vsel %vm274_vm7, 1.0, %v1650_v59 }
  0x6a   :  { %503 = vperm.xlu2 %1648, %v93_v47   ;;  %v56_v47 = vld [vmem:[%s2706_s0 + $0x138] sm:$0xff] }
  0x6b   :  { %425 = vperm.xlu1 %1647, %v67_v48   ;;  %500 = vperm.xlu0 %1646, %v92_v49   ;;  %v80_v48 = vld [vmem:[%s2708_s1 + $0x68] sm:$0xff]  ;;  %v730_v49 = vld [vmem:[%s2709_s3 + $0x30] sm:$0x3] }
  0x6c   :  { %v1821_v50 = vpop.permute.xlu2 %144  ;;  %1530 = vmatpush.msk.msra.mxu0 %vm882_vm11, %v730_v49  ;;  %1632 = vmatpush.msk.msra.mxu2 %vm882_vm11, %v730_v49  ;;  %v62_v49 = vld [vmem:[%s2706_s0 + $0x168] sm:$0xff] }
  0x6d   :  { %vm277_vm12 = vcmp.eq.s32.totalorder %v1821_v50, %v1832_v55  ;;  %v57_v50 = vld [vmem:[%s2706_s0 + $0x140] sm:$0xff] }
  0x6e   :  { %896 = vmatpush.msra.mxu0 %v729_v51  ;;  %1633 = vmatpush.msra.mxu2 %v729_v51  ;;  %v86_v51 = vld [vmem:[%s2708_s1 + $0x98] sm:$0xff] }
  0x72   :  { %431 = vperm.xlu2 %1648, %v69_v52  }
  0x73   :  { %506 = vperm.xlu1 %1647, %v94_v53   ;;  %428 = vperm.xlu0 %1646, %v68_v54   ;;  %v728_v54 = vld [vmem:[%s2709_s3 + $0x20] sm:$0xff] }
  0x74   :  { %v1834_v56 = vpop.permute.xlu2 %153  ;;  %897 = vmatpush.msra.mxu0 %v728_v54  ;;  %1634 = vmatpush.msra.mxu2 %v728_v54 }
  0x75   :  { %v127_v57 = vpop.permute.xlu1 %126  ;;  %v121_v58 = vpop.permute.xlu0 %120 }
  0x76   :  { %vm269_vm2 = vcmp.eq.s32.totalorder %v121_v58, %v1832_v55  ;;  %vm271_vm4 = vcmp.eq.s32.totalorder %v127_v57, %v1832_v55  ;;  %v1438_v57 = vsel %vm277_vm12, 1.0, %v1650_v59  ;;  %v107_v58 = vld [vmem:[%s2708_s1 + $0x140] sm:$0xff] }
  0x77   :  { %v1430_v60 = vsel %vm269_vm2, 1.0, %v1650_v59  ;;  %v1432_v10 = vsel %vm271_vm4, 1.0, %v1650_v59  ;;  %vm280_vm2 = vcmp.eq.s32.totalorder %v1834_v56, %v1832_v55  ;;  %v60_v56 = vld [vmem:[%s2706_s0 + $0x158] sm:$0xff] }
  0x78   :  { %1582 = vmatmul.msk.f32.vlgmr.msra.gmra.mxu1 %vm1053_vm1, %v1430_v60  ;;  %v81_v60 = vld [vmem:[%s2708_s1 + $0x70] sm:$0xff] }
  0x7a   :  { %512 = vperm.xlu2 %1648, %v96_v61   ;;  %v727_v61 = vld [vmem:[%s2709_s3 + $0x18] sm:$0xff] }
  0x7b   :  { %434 = vperm.xlu1 %1647, %v70_v62   ;;  %509 = vperm.xlu0 %1646, %v95_v63   ;;  %v726_v62 = vld [vmem:[%s2709_s3 + $0x10] sm:$0xff] }
  0x7c   :  { %v1848_v0 = vpop.permute.xlu2 %162  ;;  %898 = vmatpush.msra.mxu0 %v727_v61  ;;  %1635 = vmatpush.msra.mxu2 %v727_v61  ;;  %v113_v61 = vld [vmem:[%s2708_s1 + $0x170] sm:$0xff] }
  0x7d   :  { %v130_v1 = vpop.permute.xlu1 %129  ;;  %v124_v2 = vpop.permute.xlu0 %123  ;;  %vm283_vm12 = vcmp.eq.s32.totalorder %v1848_v0, %v1832_v55  ;;  %v63_v0 = vld [vmem:[%s2706_s0 + $0x170] sm:$0xff] }
  0x7e   :  { %vm270_vm3 = vcmp.eq.s32.totalorder %v124_v2, %v1832_v55  ;;  %vm272_vm5 = vcmp.eq.s32.totalorder %v130_v1, %v1832_v55  ;;  %v725_v1 = vld [vmem:[%s2709_s3 + $0x8] sm:$0xff]  ;;  %899 = vmatpush.msra.mxu0 %v726_v62  ;;  %1636 = vmatpush.msra.mxu2 %v726_v62  ;;  %v1444_v62 = vsel %vm283_vm12, 1.0, %v1650_v59 }
  0x7f   :  { %v1431_v3 = vsel %vm270_vm3, 1.0, %v1650_v59  ;;  %v1433_v17 = vsel %vm272_vm5, 1.0, %v1650_v59 }
  0x80   :  { %1583 = vmatmul.msk.f32.gmra.mxu1 %vm1053_vm1, %v1431_v3  ;;  %900 = vmatpush.msra.mxu0 %v725_v1 }
  0x81   :  { %1637 = vmatpush.msra.mxu2 %v725_v1 }
  0x82   :  { %440 = vperm.xlu2 %1648, %v72_v4   ;;  %v724_v4 = vld [vmem:[%s2709_s3] sm:$0xff] }
  0x83   :  { %515 = vperm.xlu1 %1647, %v97_v5   ;;  %437 = vperm.xlu0 %1646, %v71_v6  }
  0x84   :  { %v1863_v7 = vpop.permute.xlu2 %171  ;;  %901 = vmatpush.msra.mxu0 %v724_v4  ;;  %1638 = vmatpush.msra.mxu2 %v724_v4 }
  0x85   :  { %v1865_v8 = vpop.permute.xlu1 %141  ;;  %v139_v9 = vpop.permute.xlu0 %138 }
  0x86   :  { %vm275_vm9 = vcmp.eq.s32.totalorder %v139_v9, %v1832_v55  ;;  %vm276_vm10 = vcmp.eq.s32.totalorder %v1865_v8, %v1832_v55  ;;  %v108_v8 = vld [vmem:[%s2708_s1 + $0x148] sm:$0xff] }
  0x87   :  { %v1436_v38 = vsel %vm275_vm9, 1.0, %v1650_v59  ;;  %v1437_v44 = vsel %vm276_vm10, 1.0, %v1650_v59  ;;  %v58_v9 = vld [vmem:[%s2706_s0 + $0x148] sm:$0xff] }
  0x88   :  { %1584 = vmatmul.msk.f32.gmra.mxu1 %vm1053_vm1, %v1432_v10  ;;  %v82_v10 = vld [vmem:[%s2708_s1 + $0x78] sm:$0xff] }
  0x8a   :  { %521 = vperm.xlu2 %1648, %v99_v11  }
  0x8b   :  { %443 = vperm.xlu1 %1647, %v73_v12   ;;  %518 = vperm.xlu0 %1646, %v98_v13  }
  0x8c   :  { %v1879_v14 = vpop.permute.xlu2 %180 }
  0x8d   :  { %v1881_v15 = vpop.permute.xlu1 %150  ;;  %v1883_v16 = vpop.permute.xlu0 %147 }
  0x8e   :  { %vm278_vm13 = vcmp.eq.s32.totalorder %v1883_v16, %v1832_v55  ;;  %vm279_vm15 = vcmp.eq.s32.totalorder %v1881_v15, %v1832_v55  ;;  %v59_v15 = vld [vmem:[%s2706_s0 + $0x150] sm:$0xff] }
  0x8f   :  { %v1439_v5 = vsel %vm278_vm13, 1.0, %v1650_v59  ;;  %v1440_v16 = vsel %vm279_vm15, 1.0, %v1650_v59 }
  0x90   :  { %1585 = vmatmul.msk.f32.gmra.mxu1 %vm1053_vm1, %v1433_v17 }
  0x92   :  { %449 = vperm.xlu2 %1648, %v75_v18   ;;  %v109_v18 = vld [vmem:[%s2708_s1 + $0x150] sm:$0xff] }
  0x93   :  { %524 = vperm.xlu1 %1647, %v100_v19   ;;  %446 = vperm.xlu0 %1646, %v74_v20   ;;  %v83_v19 = vld [vmem:[%s2708_s1 + $0x80] sm:$0xff] }
  0x94   :  { %v1898_v21 = vpop.permute.xlu2 %189 }
  0x95   :  { %v1900_v22 = vpop.permute.xlu1 %159  ;;  %v1902_v23 = vpop.permute.xlu0 %156 }
  0x96   :  { %vm281_vm4 = vcmp.eq.s32.totalorder %v1902_v23, %v1832_v55  ;;  %v61_v23 = vld [vmem:[%s2706_s0 + $0x160] sm:$0xff]  ;;  %vm282_vm6 = vcmp.eq.s32.totalorder %v1900_v22, %v1832_v55 }
  0x98   :  { %1586 = vmatmul.msk.f32.gmra.mxu1 %vm1053_vm1, %v1434_v24 }
  0x9a   :  { %530 = vperm.xlu2 %1648, %v102_v25  }
  0x9b   :  { %452 = vperm.xlu1 %1647, %v76_v26   ;;  %527 = vperm.xlu0 %1646, %v101_v27   ;;  %v1441_v26 = vsel %vm280_vm2, 1.0, %v1650_v59 }
  0x9c   :  { %v199_v28 = vpop.permute.xlu2 %198 }
  0x9d   :  { %vm295_vm8 = vcmp.eq.s32.totalorder %v199_v28, %v1832_v55  ;;  %v1918_v29 = vpop.permute.xlu1 %168  ;;  %v1920_v30 = vpop.permute.xlu0 %165  ;;  %v110_v28 = vld [vmem:[%s2708_s1 + $0x158] sm:$0xff] }
  0x9e   :  { %v1456_v31 = vsel %vm295_vm8, 1.0, %v1650_v59  ;;  %vm731_vm8 = vcmask 408576   ;;  %vm284_vm2 = vcmp.eq.s32.totalorder %v1920_v30, %v1832_v55  ;;  %v64_v30 = vld [vmem:[%s2706_s0 + $0x178] sm:$0xff] }
  0x9f   :  { %1608 = vmatmul.msk.f32.vlgmr.msra.gmra.mxu3 %vm1053_vm1, %v1456_v31  ;;  %v84_v31 = vld [vmem:[%s2708_s1 + $0x88] sm:$0xff] }
  0xa0   :  { %1587 = vmatmul.msk.f32.gmra.mxu1 %vm1053_vm1, %v1435_v32 }
  0xa2   :  { %458 = vperm.xlu2 %1648, %v78_v33  }
  0xa3   :  { %533 = vperm.xlu1 %1647, %v103_v34   ;;  %455 = vperm.xlu0 %1646, %v77_v35   ;;  %v1442_v34 = vsel %vm281_vm4, 1.0, %v1650_v59 }
  0xa4   :  { %v1961_v46 = vpop.permute.xlu2 %207 }
  0xa5   :  { %v1936_v36 = vpop.permute.xlu1 %177  ;;  %v1938_v37 = vpop.permute.xlu0 %174  ;;  %vm298_vm3 = vcmp.eq.s32.totalorder %v1961_v46, %v1832_v55 }
  0xa6   :  { %v1459_v27 = vsel %vm298_vm3, 1.0, %v1650_v59 }
  0xa8   :  { %1588 = vmatmul.msk.f32.gmra.mxu1 %vm1053_vm1, %v1436_v38  ;;  %v111_v38 = vld [vmem:[%s2708_s1 + $0x160] sm:$0xff] }
  0xaa   :  { %539 = vperm.xlu2 %1648, %v105_v39  }
  0xab   :  { %461 = vperm.xlu1 %1647, %v79_v40   ;;  %536 = vperm.xlu0 %1646, %v104_v41   ;;  %v85_v40 = vld [vmem:[%s2708_s1 + $0x90] sm:$0xff] }
  0xac   :  { %v2002_v63 = vpop.permute.xlu2 %216 }
  0xad   :  { %v1953_v42 = vpop.permute.xlu1 %186  ;;  %v1955_v43 = vpop.permute.xlu0 %183  ;;  %vm301_vm13 = vcmp.eq.s32.totalorder %v2002_v63, %v1832_v55  ;;  %v87_v63 = vld [vmem:[%s2708_s1 + $0xa0] sm:$0xff] }
  0xae   :  { %v1462_v1 = vsel %vm301_vm13, 1.0, %v1650_v59 }
  0xb0   :  { %1589 = vmatmul.msk.f32.gmra.mxu1 %vm1053_vm1, %v1437_v44 }
  0xb2   :  { %542 = vperm.xlu2 %1648, %v106_v45  }
  0xb3   :  { %237 = vperm.xlu1 %1647, %v56_v47   ;;  %464 = vperm.xlu0 %1646, %v80_v48   ;;  %v112_v47 = vld [vmem:[%s2708_s1 + $0x168] sm:$0xff]  ;;  %v1443_v48 = vsel %vm282_vm6, 1.0, %v1650_v59  ;;  %vm285_vm6 = vcmp.eq.s32.totalorder %v1918_v29, %v1832_v55 }
  0xb4   :  { %v2028_v11 = vpop.permute.xlu2 %225 }
  0xb5   :  { %v1978_v52 = vpop.permute.xlu1 %195  ;;  %v1980_v53 = vpop.permute.xlu0 %192  ;;  %vm304_vm12 = vcmp.eq.s32.totalorder %v2028_v11, %v1832_v55  ;;  %v66_v11 = vld [vmem:[%s2706_s0 + $0x188] sm:$0xff] }
  0xb8   :  { %1590 = vmatmul.msk.f32.gmra.mxu1 %vm1053_vm1, %v1438_v57 }
  0xba   :  { %545 = vperm.xlu2 %1648, %v107_v58  }
  0xbb   :  { %240 = vperm.xlu1 %1647, %v57_v50   ;;  %467 = vperm.xlu0 %1646, %v81_v60  }
  0xbc   :  { %v2052_v25 = vpop.permute.xlu2 %234 }
  0xbd   :  { %v205_v2 = vpop.permute.xlu1 %204  ;;  %v202_v3 = vpop.permute.xlu0 %201 }
  0xbe   :  { %vm296_vm14 = vcmp.eq.s32.totalorder %v202_v3, %v1832_v55  ;;  %vm297_vm0 = vcmp.eq.s32.totalorder %v205_v2, %v1832_v55 }
  0xbf   :  { %v1457_v6 = vsel %vm296_vm14, 1.0, %v1650_v59  ;;  %v1458_v17 = vsel %vm297_vm0, 1.0, %v1650_v59 }
  0xc0   :  { %1591 = vmatmul.msk.f32.gmra.mxu1 %vm1053_vm1, %v1439_v5  ;;  %1609 = vmatmul.msk.f32.gmra.mxu3 %vm1053_vm1, %v1457_v6 }
  0xc2   :  { %548 = vperm.xlu2 %1648, %v108_v8   ;;  %v114_v8 = vld [vmem:[%s2708_s1 + $0x178] sm:$0xff] }
  0xc3   :  { %243 = vperm.xlu1 %1647, %v58_v9   ;;  %470 = vperm.xlu0 %1646, %v82_v10   ;;  %v1445_v9 = vsel %vm284_vm2, 1.0, %v1650_v59 }
  0xc4   :  { %v504_v39 = vpop.permute.xlu2 %503 }
  0xc5   :  { %v214_v12 = vpop.permute.xlu1 %213  ;;  %v211_v13 = vpop.permute.xlu0 %210  ;;  %vm600_vm11 = vcmp.eq.s32.totalorder %v504_v39, %v1832_v55 }
  0xc6   :  { %vm299_vm5 = vcmp.eq.s32.totalorder %v211_v13, %v1832_v55  ;;  %vm300_vm7 = vcmp.eq.s32.totalorder %v214_v12, %v1832_v55  ;;  %v1506_v50 = vsel %vm600_vm11, 1.0, %v1650_v59  ;;  %v88_v12 = vld [vmem:[%s2708_s1 + $0xa8] sm:$0xff]  ;;  %vm286_vm11 = vcmp.eq.s32.totalorder %v1863_v7, %v1832_v55 }
  0xc7   :  { %v1460_v35 = vsel %vm299_vm5, 1.0, %v1650_v59  ;;  %v1461_v22 = vsel %vm300_vm7, 1.0, %v1650_v59  ;;  %v1447_v39 = vsel %vm286_vm11, 1.0, %v1650_v59 }
  0xc8   :  { %1592 = vmatmul.msk.f32.gmra.mxu1 %vm1053_vm1, %v1440_v16  ;;  %1610 = vmatmul.msk.f32.gmra.mxu3 %vm1053_vm1, %v1458_v17 }
  0xca   :  { %551 = vperm.xlu2 %1648, %v109_v18  }
  0xcb   :  { %246 = vperm.xlu1 %1647, %v59_v15   ;;  %473 = vperm.xlu0 %1646, %v83_v19  }
  0xcc   :  { %v432_v54 = vpop.permute.xlu2 %431 }
  0xcd   :  { %v2048_v20 = vpop.permute.xlu1 %222  ;;  %v2050_v24 = vpop.permute.xlu0 %219  ;;  %vm576_vm15 = vcmp.eq.s32.totalorder %v432_v54, %v1832_v55 }
  0xce   :  { %vm302_vm3 = vcmp.eq.s32.totalorder %v2050_v24, %v1832_v55  ;;  %v1482_v5 = vsel %vm576_vm15, 1.0, %v1650_v59  ;;  %vm303_vm7 = vcmp.eq.s32.totalorder %v2048_v20, %v1832_v55  ;;  %v115_v24 = vld [vmem:[%s2708_s1 + $0x180] sm:$0xff]  ;;  %vm287_vm15 = vcmp.eq.s32.totalorder %v1938_v37, %v1832_v55 }
  0xcf   :  { %v1463_v10 = vsel %vm302_vm3, 1.0, %v1650_v59  ;;  %v1464_v29 = vsel %vm303_vm7, 1.0, %v1650_v59  ;;  %v65_v20 = vld [vmem:[%s2706_s0 + $0x180] sm:$0xff] }
  0xd0   :  { %1593 = vmatmul.msk.f32.gmra.mxu1 %vm1053_vm1, %v1441_v26  ;;  %1611 = vmatmul.msk.f32.gmra.mxu3 %vm1053_vm1, %v1459_v27  ;;  %v1446_v26 = vsel %vm285_vm6, 1.0, %v1650_v59  ;;  %v89_v27 = vld [vmem:[%s2708_s1 + $0xb0] sm:$0xff]  ;;  %v91_v37 = vld [vmem:[%s2708_s1 + $0xc0] sm:$0xff] }
  0xd2   :  { %554 = vperm.xlu2 %1648, %v110_v28  }
  0xd3   :  { %249 = vperm.xlu1 %1647, %v60_v56   ;;  %476 = vperm.xlu0 %1646, %v84_v31  }
  0xd4   :  { %v513_v2 = vpop.permute.xlu2 %512 }
  0xd5   :  { %v2070_v32 = vpop.permute.xlu1 %231  ;;  %v2072_v33 = vpop.permute.xlu0 %228 }
  0xd8   :  { %1594 = vmatmul.msk.f32.gmra.mxu1 %vm1053_vm1, %v1442_v34  ;;  %1612 = vmatmul.msk.f32.gmra.mxu3 %vm1053_vm1, %v1460_v35 }
  0xda   :  { %557 = vperm.xlu2 %1648, %v111_v38   ;;  %v116_v38 = vld [vmem:[%s2708_s1 + $0x188] sm:$0xff] }
  0xdb   :  { %252 = vperm.xlu1 %1647, %v61_v23   ;;  %479 = vperm.xlu0 %1646, %v85_v40   ;;  %v1465_v23 = vsel %vm304_vm12, 1.0, %v1650_v59  ;;  %v90_v40 = vld [vmem:[%s2708_s1 + $0xb8] sm:$0xff] }
  0xdc   :  { %v441_v17 = vpop.permute.xlu2 %440 }
  0xdd   :  { %v426_v41 = vpop.permute.xlu1 %425  ;;  %v501_v44 = vpop.permute.xlu0 %500  ;;  %vm579_vm13 = vcmp.eq.s32.totalorder %v441_v17, %v1832_v55 }
  0xde   :  { %vm574_vm9 = vcmp.eq.s32.totalorder %v426_v41, %v1832_v55  ;;  %vm599_vm10 = vcmp.eq.s32.totalorder %v501_v44, %v1832_v55 }
  0xdf   :  { %v1480_v45 = vsel %vm574_vm9, 1.0, %v1650_v59  ;;  %v1505_v46 = vsel %vm599_vm10, 1.0, %v1650_v59  ;;  %vm603_vm9 = vcmp.eq.s32.totalorder %v513_v2, %v1832_v55 }
  0xe0   :  { %1531 = vmatmul.msk.f32.vlgmr.msra.gmra.mxu0 %vm731_vm8, %v1480_v45  ;;  %1556 = vmatmul.msk.f32.vlgmr.msra.gmra.mxu2 %vm731_vm8, %v1505_v46  ;;  %v1509_v34 = vsel %vm603_vm9, 1.0, %v1650_v59  ;;  %v1485_v46 = vsel %vm579_vm13, 1.0, %v1650_v59  ;;  %vm289_vm9 = vcmp.eq.s32.totalorder %v1879_v14, %v1832_v55  ;;  %vm290_vm13 = vcmp.eq.s32.totalorder %v1955_v43, %v1832_v55 }
  0xe1   :  { %1595 = vmatmul.msk.f32.gmra.mxu1 %vm1053_vm1, %v1443_v48  ;;  %1613 = vmatmul.msk.f32.gmra.mxu3 %vm1053_vm1, %v1461_v22  ;;  %v1448_v48 = vsel %vm287_vm15, 1.0, %v1650_v59 }
  0xe2   :  { %560 = vperm.xlu2 %1648, %v112_v47  }
  0xe3   :  { %255 = vperm.xlu1 %1647, %v62_v49   ;;  %482 = vperm.xlu0 %1646, %v86_v51  }
  0xe4   :  { %v522_v7 = vpop.permute.xlu2 %521 }
  0xe5   :  { %v507_v57 = vpop.permute.xlu1 %506  ;;  %v429_v58 = vpop.permute.xlu0 %428  ;;  %vm606_vm6 = vcmp.eq.s32.totalorder %v522_v7, %v1832_v55 }
  0xe6   :  { %vm575_vm14 = vcmp.eq.s32.totalorder %v429_v58, %v1832_v55  ;;  %vm601_vm0 = vcmp.eq.s32.totalorder %v507_v57, %v1832_v55 }
  0xe7   :  { %v1481_v60 = vsel %vm575_vm14, 1.0, %v1650_v59  ;;  %v1507_v6 = vsel %vm601_vm0, 1.0, %v1650_v59  ;;  %vm305_vm0 = vcmp.eq.s32.totalorder %v2072_v33, %v1832_v55 }
  0xe8   :  { %1532 = vmatmul.msk.f32.gmra.mxu0 %vm731_vm8, %v1481_v60  ;;  %1557 = vmatmul.msk.f32.gmra.mxu2 %vm731_vm8, %v1506_v50  ;;  %v1466_v22 = vsel %vm305_vm0, 1.0, %v1650_v59  ;;  %vm291_vm0 = vcmp.eq.s32.totalorder %v1953_v42, %v1832_v55 }
  0xe9   :  { %1596 = vmatmul.msk.f32.gmra.mxu1 %vm1053_vm1, %v1444_v62  ;;  %1614 = vmatmul.msk.f32.gmra.mxu3 %vm1053_vm1, %v1462_v1  ;;  %v1512_v1 = vsel %vm606_vm6, 1.0, %v1650_v59 }
  0xea   :  { %563 = vperm.xlu2 %1648, %v113_v61  }
  0xeb   :  { %258 = vperm.xlu1 %1647, %v63_v0   ;;  %485 = vperm.xlu0 %1646, %v87_v63   ;;  %v1450_v63 = vsel %vm289_vm9, 1.0, %v1650_v59 }
  0xec   :  { %v450_v33 = vpop.permute.xlu2 %449 }
  0xed   :  { %v435_v3 = vpop.permute.xlu1 %434  ;;  %v510_v4 = vpop.permute.xlu0 %509  ;;  %vm582_vm11 = vcmp.eq.s32.totalorder %v450_v33, %v1832_v55 }
  0xee   :  { %vm577_vm4 = vcmp.eq.s32.totalorder %v435_v3, %v1832_v55  ;;  %vm602_vm5 = vcmp.eq.s32.totalorder %v510_v4, %v1832_v55  ;;  %v1488_v4 = vsel %vm582_vm11, 1.0, %v1650_v59 }
  0xef   :  { %v1483_v15 = vsel %vm577_vm4, 1.0, %v1650_v59  ;;  %v1508_v19 = vsel %vm602_vm5, 1.0, %v1650_v59  ;;  %vm288_vm4 = vcmp.eq.s32.totalorder %v1936_v36, %v1832_v55  ;;  %vm306_vm5 = vcmp.eq.s32.totalorder %v2070_v32, %v1832_v55 }
  0xf0   :  { %1533 = vmatmul.msk.f32.gmra.mxu0 %vm731_vm8, %v1482_v5  ;;  %1558 = vmatmul.msk.f32.gmra.mxu2 %vm731_vm8, %v1507_v6  ;;  %v1449_v50 = vsel %vm288_vm4, 1.0, %v1650_v59  ;;  %v1467_v60 = vsel %vm306_vm5, 1.0, %v1650_v59  ;;  %v1451_v6 = vsel %vm290_vm13, 1.0, %v1650_v59  ;;  %vm292_vm5 = vcmp.eq.s32.totalorder %v1898_v21, %v1832_v55 }
  0xf1   :  { %1597 = vmatmul.msk.f32.gmra.mxu1 %vm1053_vm1, %v1445_v9  ;;  %1615 = vmatmul.msk.f32.gmra.mxu3 %vm1053_vm1, %v1463_v10 }
  0xf2   :  { %566 = vperm.xlu2 %1648, %v114_v8  }
  0xf3   :  { %261 = vperm.xlu1 %1647, %v64_v30   ;;  %488 = vperm.xlu0 %1646, %v88_v12  }
  0xf4   :  { %v531_v36 = vpop.permute.xlu2 %530 }
  0xf5   :  { %v516_v13 = vpop.permute.xlu1 %515  ;;  %v2161_v16 = vpop.f32.mrf.mxu1 }
  0xf6   :  { %v438_v18 = vpop.permute.xlu0 %437  ;;  %vm604_vm14 = vcmp.eq.s32.totalorder %v516_v13, %v1832_v55  ;;  %v1452_v13 = vsel %vm291_vm0, 1.0, %v1650_v59 }
  0xf7   :  { %vm578_vm10 = vcmp.eq.s32.totalorder %v438_v18, %v1832_v55  ;;  %v1510_v47 = vsel %vm604_vm14, 1.0, %v1650_v59 }
  0xf8   :  { %1534 = vmatmul.msk.f32.gmra.mxu0 %vm731_vm8, %v1483_v15  ;;  %1559 = vmatmul.msk.f32.gmra.mxu2 %vm731_vm8, %v1508_v19  ;;  %v1484_v35 = vsel %vm578_vm10, 1.0, %v1650_v59  ;;  %vm307_vm10 = vcmp.eq.s32.totalorder %v2052_v25, %v1832_v55 }
  0xf9   :  { %1598 = vmatmul.msk.f32.gmra.mxu1 %vm1053_vm1, %v1446_v26  ;;  %1616 = vmatmul.msk.f32.gmra.mxu3 %vm1053_vm1, %v1464_v29  ;;  %v1468_v2 = vsel %vm307_vm10, 1.0, %v1650_v59  ;;  %v1453_v29 = vsel %vm292_vm5, 1.0, %v1650_v59  ;;  %vm293_vm10 = vcmp.eq.s32.totalorder %v1980_v53, %v1832_v55 }
  0xfa   :  { %569 = vperm.xlu2 %1648, %v115_v24  }
  0xfb   :  { %264 = vperm.xlu1 %1647, %v65_v20   ;;  %491 = vperm.xlu0 %1646, %v89_v27  }
  0xfc   :  { %v459_v3 = vpop.permute.xlu2 %458 }
  0xfd   :  { %v444_v28 = vpop.permute.xlu1 %443  ;;  %v2186_v56 = vpop.f32.mrf.mxu1 }
  0xfe   :  { %v519_v31 = vpop.permute.xlu0 %518  ;;  %vm580_vm2 = vcmp.eq.s32.totalorder %v444_v28, %v1832_v55 }
  0xff   :  { %vm605_vm3 = vcmp.eq.s32.totalorder %v519_v31, %v1832_v55  ;;  %v1486_v57 = vsel %vm580_vm2, 1.0, %v1650_v59 }
 0x100   :  { %1535 = vmatmul.msk.f32.gmra.mxu0 %vm731_vm8, %v1484_v35  ;;  %1560 = vmatmul.msk.f32.gmra.mxu2 %vm731_vm8, %v1509_v34  ;;  %v1511_v58 = vsel %vm605_vm3, 1.0, %v1650_v59  ;;  %vm609_vm3 = vcmp.eq.s32.totalorder %v531_v36, %v1832_v55 }
 0x101   :  { %1599 = vmatmul.msk.f32.gmra.mxu1 %vm1053_vm1, %v1447_v39  ;;  %1617 = vmatmul.msk.f32.gmra.mxu3 %vm1053_vm1, %v1465_v23  ;;  %v1515_v19 = vsel %vm609_vm3, 1.0, %v1650_v59 }
 0x102   :  { %572 = vperm.xlu2 %1648, %v116_v38   ;;  %v1454_v38 = vsel %vm293_vm10, 1.0, %v1650_v59 }
 0x103   :  { %267 = vperm.xlu1 %1647, %v66_v11   ;;  %494 = vperm.xlu0 %1646, %v90_v40  }
 0x104   :  { %v540_v17 = vpop.permute.xlu2 %539 }
 0x105   :  { %v525_v41 = vpop.permute.xlu1 %524  ;;  %v2211_v44 = vpop.f32.mrf.mxu1  ;;  %vm612_vm0 = vcmp.eq.s32.totalorder %v540_v17, %v1832_v55 }
 0x106   :  { %v447_v45 = vpop.permute.xlu0 %446  ;;  %vm607_vm12 = vcmp.eq.s32.totalorder %v525_v41, %v1832_v55 }
 0x107   :  { %vm581_vm7 = vcmp.eq.s32.totalorder %v447_v45, %v1832_v55  ;;  %v1513_v5 = vsel %vm607_vm12, 1.0, %v1650_v59 }
 0x108   :  { %1536 = vmatmul.msk.f32.gmra.mxu0 %vm731_vm8, %v1485_v46  ;;  %1561 = vmatmul.msk.f32.gmra.mxu2 %vm731_vm8, %v1510_v47  ;;  %v1487_v0 = vsel %vm581_vm7, 1.0, %v1650_v59  ;;  %vm585_vm7 = vcmp.eq.s32.totalorder %v459_v3, %v1832_v55 }
 0x109   :  { %1600 = vmatmul.msk.f32.gmra.mxu1 %vm1053_vm1, %v1448_v48  ;;  %1618 = vmatmul.msk.f32.gmra.mxu3 %vm1053_vm1, %v1466_v22  ;;  %v1491_v31 = vsel %vm585_vm7, 1.0, %v1650_v59  ;;  %v1518_v22 = vsel %vm612_vm0, 1.0, %v1650_v59 }
 0x10b   :  { %497 = vperm.xlu0 %1646, %v91_v37  }
 0x10c   :  { %v543_v21 = vpop.permute.xlu2 %542 }
 0x10d   :  { %v453_v49 = vpop.permute.xlu1 %452  ;;  %v2230_v51 = vpop.f32.mrf.mxu1 }
 0x10e   :  { %v528_v54 = vpop.permute.xlu0 %527  ;;  %vm583_vm14 = vcmp.eq.s32.totalorder %v453_v49, %v1832_v55 }
 0x10f   :  { %vm608_vm15 = vcmp.eq.s32.totalorder %v528_v54, %v1832_v55  ;;  %v1489_v10 = vsel %vm583_vm14, 1.0, %v1650_v59  ;;  %vm294_vm14 = vcmp.eq.s32.totalorder %v1978_v52, %v1832_v55 }
 0x110   :  { %1537 = vmatmul.msk.f32.gmra.mxu0 %vm731_vm8, %v1486_v57  ;;  %1562 = vmatmul.msk.f32.gmra.mxu2 %vm731_vm8, %v1511_v58  ;;  %v1514_v30 = vsel %vm608_vm15, 1.0, %v1650_v59  ;;  %v1455_v45 = vsel %vm294_vm14, 1.0, %v1650_v59 }
 0x111   :  { %1601 = vmatmul.msk.f32.gmra.mxu1 %vm1053_vm1, %v1449_v50  ;;  %1619 = vmatmul.msk.f32.gmra.mxu3 %vm1053_vm1, %v1467_v60 }
 0x114   :  { %v546_v53 = vpop.permute.xlu2 %545 }
 0x115   :  { %v2246_v32 = vpop.permute.xlu1 %533  ;;  %v2248_v61 = vpop.f32.mrf.mxu1  ;;  %vm614_vm7 = vcmp.eq.s32.totalorder %v546_v53, %v1832_v55 }
 0x116   :  { %v456_v62 = vpop.permute.xlu0 %455  ;;  %vm610_vm9 = vcmp.eq.s32.totalorder %v2246_v32, %v1832_v55 }
 0x117   :  { %vm584_vm4 = vcmp.eq.s32.totalorder %v456_v62, %v1832_v55  ;;  %v1516_v34 = vsel %vm610_vm9, 1.0, %v1650_v59 }
 0x118   :  { %1538 = vmatmul.msk.f32.gmra.mxu0 %vm731_vm8, %v1487_v0  ;;  %1563 = vmatmul.msk.f32.gmra.mxu2 %vm731_vm8, %v1512_v1  ;;  %v1490_v24 = vsel %vm584_vm4, 1.0, %v1650_v59  ;;  %vm613_vm4 = vcmp.eq.s32.totalorder %v543_v21, %v1832_v55 }
 0x119   :  { %1602 = vmatmul.msk.f32.gmra.mxu1 %vm1053_vm1, %v1450_v63  ;;  %1620 = vmatmul.msk.f32.gmra.mxu3 %vm1053_vm1, %v1468_v2  ;;  %v1519_v50 = vsel %vm613_vm4, 1.0, %v1650_v59  ;;  %v1520_v2 = vsel %vm614_vm7, 1.0, %v1650_v59 }
 0x11c   :  { %v549_v48 = vpop.permute.xlu2 %548 }
 0x11d   :  { %v2262_v14 = vpop.permute.xlu1 %461  ;;  %v2264_v25 = vpop.f32.mrf.mxu1 }
 0x11e   :  { %v537_v8 = vpop.permute.xlu0 %536  ;;  %vm586_vm12 = vcmp.eq.s32.totalorder %v2262_v14, %v1832_v55 }
 0x11f   :  { %vm611_vm13 = vcmp.eq.s32.totalorder %v537_v8, %v1832_v55  ;;  %v1492_v11 = vsel %vm586_vm12, 1.0, %v1650_v59 }
 0x120   :  { %1539 = vmatmul.msk.f32.gmra.mxu0 %vm731_vm8, %v1488_v4  ;;  %1564 = vmatmul.msk.f32.gmra.mxu2 %vm731_vm8, %v1513_v5  ;;  %v1517_v40 = vsel %vm611_vm13, 1.0, %v1650_v59  ;;  %vm1375_vm13 = vcmask 392192  }
 0x121   :  { %1603 = vmatmul.msk.f32.gmra.mxu1 %vm1053_vm1, %v1451_v6 }
 0x122   :  { %v2330_v46 = vpop.f32.mrf.mxu3 }
 0x124   :  { %v552_v32 = vpop.permute.xlu2 %551 }
 0x125   :  { %v238_v43 = vpop.permute.xlu1 %237  ;;  %v2276_v9 = vpop.f32.mrf.mxu1 }
 0x126   :  { %vm308_vm2 = vcmp.eq.s32.totalorder %v238_v43, %v1832_v55  ;;  %v465_v42 = vpop.permute.xlu0 %464 }
 0x127   :  { %v1469_v12 = vsel %vm308_vm2, 1.0, %v1650_v59  ;;  %vm587_vm2 = vcmp.eq.s32.totalorder %v465_v42, %v1832_v55 }
 0x128   :  { %1540 = vmatmul.msk.f32.gmra.mxu0 %vm731_vm8, %v1489_v10  ;;  %1565 = vmatmul.msk.f32.gmra.mxu2 %vm731_vm8, %v1514_v30  ;;  %v1493_v37 = vsel %vm587_vm2, 1.0, %v1650_v59 }
 0x129   :  { %1604 = vmatmul.msk.f32.gmra.mxu1 %vm1053_vm1, %v1452_v13  ;;  %1621 = vmatmul.msk.f32.gmra.mxu3 %vm1053_vm1, %v1469_v12 }
 0x12c   :  { %v555_v4 = vpop.permute.xlu2 %554 }
 0x12d   :  { %v241_v18 = vpop.permute.xlu1 %240  ;;  %v2291_v15 = vpop.f32.mrf.mxu1 }
 0x12e   :  { %vm309_vm6 = vcmp.eq.s32.totalorder %v241_v18, %v1832_v55  ;;  %v468_v20 = vpop.permute.xlu0 %467 }
 0x12f   :  { %v1470_v26 = vsel %vm309_vm6, 1.0, %v1650_v59  ;;  %vm588_vm5 = vcmp.eq.s32.totalorder %v468_v20, %v1832_v55 }
 0x130   :  { %1541 = vmatmul.msk.f32.gmra.mxu0 %vm731_vm8, %v1490_v24  ;;  %1566 = vmatmul.msk.f32.gmra.mxu2 %vm731_vm8, %v1515_v19  ;;  %v1494_v60 = vsel %vm588_vm5, 1.0, %v1650_v59 }
 0x131   :  { %1605 = vmatmul.msk.f32.gmra.mxu1 %vm1053_vm1, %v1453_v29  ;;  %1622 = vmatmul.msk.f32.gmra.mxu3 %vm1053_vm1, %v1470_v26 }
 0x134   :  { %v558_v42 = vpop.permute.xlu2 %557 }
 0x135   :  { %v244_v27 = vpop.permute.xlu1 %243  ;;  %v2307_v28 = vpop.f32.mrf.mxu1 }
 0x136   :  { %vm310_vm11 = vcmp.eq.s32.totalorder %v244_v27, %v1832_v55  ;;  %v471_v7 = vpop.permute.xlu0 %470 }
 0x137   :  { %v1471_v35 = vsel %vm310_vm11, 1.0, %v1650_v59  ;;  %vm589_vm9 = vcmp.eq.s32.totalorder %v471_v7, %v1832_v55  ;;  %vm615_vm11 = vcmp.eq.s32.totalorder %v549_v48, %v1832_v55 }
 0x138   :  { %1542 = vmatmul.msk.f32.gmra.mxu0 %vm731_vm8, %v1491_v31  ;;  %1567 = vmatmul.msk.f32.gmra.mxu2 %vm731_vm8, %v1516_v34  ;;  %v1495_v14 = vsel %vm589_vm9, 1.0, %v1650_v59  ;;  %v1521_v12 = vsel %vm615_vm11, 1.0, %v1650_v59 }
 0x139   :  { %1606 = vmatmul.msk.f32.gmra.mxu1 %vm1053_vm1, %v1454_v38  ;;  %1623 = vmatmul.msk.f32.gmra.mxu3 %vm1053_vm1, %v1471_v35 }
 0x13d   :  { %v247_v39 = vpop.permute.xlu1 %246  ;;  %v2323_v23 = vpop.f32.mrf.mxu1 }
 0x13e   :  { %vm311_vm15 = vcmp.eq.s32.totalorder %v247_v39, %v1832_v55  ;;  %v474_v49 = vpop.permute.xlu0 %473 }
 0x13f   :  { %v1472_v41 = vsel %vm311_vm15, 1.0, %v1650_v59  ;;  %vm590_vm12 = vcmp.eq.s32.totalorder %v474_v49, %v1832_v55  ;;  %vm616_vm15 = vcmp.eq.s32.totalorder %v552_v32, %v1832_v55 }
 0x140   :  { %1543 = vmatmul.msk.f32.gmra.mxu0 %vm731_vm8, %v1492_v11  ;;  %1568 = vmatmul.msk.f32.gmra.mxu2 %vm731_vm8, %v1517_v40  ;;  %v1496_v13 = vsel %vm590_vm12, 1.0, %v1650_v59  ;;  %v1522_v21 = vsel %vm616_vm15, 1.0, %v1650_v59 }
 0x141   :  { %1607 = vmatmul.msk.f32.gmra.mxu1 %vm1053_vm1, %v1455_v45  ;;  %1624 = vmatmul.msk.f32.gmra.mxu3 %vm1053_vm1, %v1472_v41  ;;  %v561_v41 = vpop.permute.xlu2 %560 }
 0x143   :  { %v2344_v54 = vpop.f32.mrf.mxu3 }
 0x145   :  { %v250_v52 = vpop.permute.xlu1 %249  ;;  %v2338_v47 = vpop.f32.mrf.mxu1 }
 0x146   :  { %vm312_vm3 = vcmp.eq.s32.totalorder %v250_v52, %v1832_v55  ;;  %v477_v62 = vpop.permute.xlu0 %476 }
 0x147   :  { %v1473_v33 = vsel %vm312_vm3, 1.0, %v1650_v59  ;;  %vm591_vm0 = vcmp.eq.s32.totalorder %v477_v62, %v1832_v55  ;;  %vm617_vm3 = vcmp.eq.s32.totalorder %v555_v4, %v1832_v55 }
 0x148   :  { %1544 = vmatmul.msk.f32.gmra.mxu0 %vm731_vm8, %v1493_v37  ;;  %1569 = vmatmul.msk.f32.gmra.mxu2 %vm731_vm8, %v1518_v22  ;;  %v1497_v20 = vsel %vm591_vm0, 1.0, %v1650_v59  ;;  %v1523_v7 = vsel %vm617_vm3, 1.0, %v1650_v59 }
 0x149   :  { %1625 = vmatmul.msk.f32.gmra.mxu3 %vm1053_vm1, %v1473_v33 }
 0x14b   :  { %v2360_v1 = vpop.f32.mrf.mxu3 }
 0x14d   :  { %v253_v57 = vpop.permute.xlu1 %252  ;;  %v2351_v58 = vpop.f32.mrf.mxu1 }
 0x14e   :  { %vm313_vm6 = vcmp.eq.s32.totalorder %v253_v57, %v1832_v55  ;;  %v480_v5 = vpop.permute.xlu0 %479 }
 0x14f   :  { %v1474_v36 = vsel %vm313_vm6, 1.0, %v1650_v59  ;;  %vm592_vm4 = vcmp.eq.s32.totalorder %v480_v5, %v1832_v55  ;;  %vm618_vm6 = vcmp.eq.s32.totalorder %v558_v42, %v1832_v55 }
 0x150   :  { %1545 = vmatmul.msk.f32.gmra.mxu0 %vm731_vm8, %v1494_v60  ;;  %1570 = vmatmul.msk.f32.gmra.mxu2 %vm731_vm8, %v1519_v50  ;;  %v1498_v11 = vsel %vm592_vm4, 1.0, %v1650_v59  ;;  %v1524_v49 = vsel %vm618_vm6, 1.0, %v1650_v59 }
 0x151   :  { %1626 = vmatmul.msk.f32.gmra.mxu3 %vm1053_vm1, %v1474_v36 }
 0x153   :  { %v2375_v6 = vpop.f32.mrf.mxu3 }
 0x155   :  { %v256_v0 = vpop.permute.xlu1 %255  ;;  %v2364_v63 = vpop.f32.mrf.mxu1 }
 0x156   :  { %vm314_vm10 = vcmp.eq.s32.totalorder %v256_v0, %v1832_v55  ;;  %v483_v24 = vpop.permute.xlu0 %482 }
 0x157   :  { %v1475_v3 = vsel %vm314_vm10, 1.0, %v1650_v59  ;;  %vm593_vm7 = vcmp.eq.s32.totalorder %v483_v24, %v1832_v55  ;;  %vm619_vm10 = vcmp.eq.s32.totalorder %v561_v41, %v1832_v55 }
 0x158   :  { %1546 = vmatmul.msk.f32.gmra.mxu0 %vm731_vm8, %v1495_v14  ;;  %1571 = vmatmul.msk.f32.gmra.mxu2 %vm731_vm8, %v1520_v2  ;;  %v1499_v57 = vsel %vm593_vm7, 1.0, %v1650_v59  ;;  %v1525_v14 = vsel %vm619_vm10, 1.0, %v1650_v59 }
 0x159   :  { %1627 = vmatmul.msk.f32.gmra.mxu3 %vm1053_vm1, %v1475_v3 }
 0x15b   :  { %v2401_v27 = vpop.f32.mrf.mxu3 }
 0x15d   :  { %v903_v8 = vpop.f32.mrf.mxu0  ;;  %v259_v43 = vpop.permute.xlu1 %258 }
 0x15e   :  { %v1226_v10 = vadd.f32 %v2161_v16, %v903_v8  ;;  %vm315_vm14 = vcmp.eq.s32.totalorder %v259_v43, %v1832_v55  ;;  %v2379_v30 = vpop.f32.mrf.mxu1  ;;  %v486_v45 = vpop.permute.xlu0 %485 }
 0x15f   :  { %v1476_v17 = vsel %vm315_vm14, 1.0, %v1650_v59  ;;  %vm594_vm11 = vcmp.eq.s32.totalorder %v486_v45, %v1832_v55 }
 0x160   :  { %1376 = vst.msk [vmem:[%s2710_s4] sm:$0xff] %vm1375_vm13, %v1226_v10  ;;  %1547 = vmatmul.msk.f32.gmra.mxu0 %vm731_vm8, %v1496_v13  ;;  %1572 = vmatmul.msk.f32.gmra.mxu2 %vm731_vm8, %v1521_v12  ;;  %v1500_v3 = vsel %vm594_vm11, 1.0, %v1650_v59 }
 0x161   :  { %1628 = vmatmul.msk.f32.gmra.mxu3 %vm1053_vm1, %v1476_v17 }
 0x163   :  { %v2391_v16 = vpop.f32.mrf.mxu2 }
 0x165   :  { %v262_v18 = vpop.permute.xlu1 %261  ;;  %v906_v19 = vpop.f32.mrf.mxu0 }
 0x166   :  { %vm316_vm2 = vcmp.eq.s32.totalorder %v262_v18, %v1832_v55  ;;  %v1229_v26 = vadd.f32 %v2186_v56, %v906_v19  ;;  %v2397_v29 = vpop.f32.mrf.mxu1 }
 0x167   :  { %v1477_v31 = vsel %vm316_vm2, 1.0, %v1650_v59 }
 0x168   :  { %1377 = vst.msk [vmem:[%s2710_s4 + $0x8] sm:$0xff] %vm1375_vm13, %v1229_v26  ;;  %1548 = vmatmul.msk.f32.gmra.mxu0 %vm731_vm8, %v1497_v20  ;;  %1573 = vmatmul.msk.f32.gmra.mxu2 %vm731_vm8, %v1522_v21 }
 0x169   :  { %1629 = vmatmul.msk.f32.gmra.mxu3 %vm1053_vm1, %v1477_v31 }
 0x16b   :  { %v981_v56 = vpop.f32.mrf.mxu2 }
 0x16c   :  { %v1304_v34 = vadd.f32 %v2330_v46, %v981_v56 }
 0x16d   :  { %v265_v35 = vpop.permute.xlu1 %264  ;;  %v909_v38 = vpop.f32.mrf.mxu0 }
 0x16e   :  { %1402 = vst.msk [vmem:[%s2710_s4 + $0xd0] sm:$0xff] %vm1375_vm13, %v1304_v34  ;;  %vm317_vm5 = vcmp.eq.s32.totalorder %v265_v35, %v1832_v55  ;;  %v1232_v53 = vadd.f32 %v2211_v44, %v909_v38  ;;  %v2420_v39 = vpop.f32.mrf.mxu1  ;;  %v2431_v44 = vpop.f32.mrf.mxu3 }
 0x16f   :  { %v1478_v40 = vsel %vm317_vm5, 1.0, %v1650_v59 }
 0x170   :  { %1378 = vst.msk [vmem:[%s2710_s4 + $0x10] sm:$0xff] %vm1375_vm13, %v1232_v53  ;;  %1549 = vmatmul.msk.f32.gmra.mxu0 %vm731_vm8, %v1498_v11  ;;  %1574 = vmatmul.msk.f32.gmra.mxu2 %vm731_vm8, %v1523_v7 }
 0x171   :  { %1630 = vmatmul.msk.f32.gmra.mxu3 %vm1053_vm1, %v1478_v40 }
 0x173   :  { %v984_v46 = vpop.f32.mrf.mxu2 }
 0x174   :  { %v1307_v52 = vadd.f32 %v2344_v54, %v984_v46  ;;  %v489_v54 = vpop.permute.xlu0 %488 }
 0x175   :  { %v268_v48 = vpop.permute.xlu1 %267  ;;  %v912_v22 = vpop.f32.mrf.mxu0  ;;  %vm595_vm12 = vcmp.eq.s32.totalorder %v489_v54, %v1832_v55 }
 0x176   :  { %1403 = vst.msk [vmem:[%s2710_s4 + $0xd8] sm:$0xff] %vm1375_vm13, %v1307_v52  ;;  %vm318_vm9 = vcmp.eq.s32.totalorder %v268_v48, %v1832_v55  ;;  %v1235_v37 = vadd.f32 %v2230_v51, %v912_v22  ;;  %v2443_v33 = vpop.f32.mrf.mxu1  ;;  %v564_v51 = vpop.permute.xlu2 %563  ;;  %v1501_v17 = vsel %vm595_vm12, 1.0, %v1650_v59 }
 0x177   :  { %v1479_v50 = vsel %vm318_vm9, 1.0, %v1650_v59  ;;  %v2455_v60 = vpop.f32.mrf.mxu3 }
 0x178   :  { %1379 = vst.msk [vmem:[%s2710_s4 + $0x18] sm:$0xff] %vm1375_vm13, %v1235_v37  ;;  %1550 = vmatmul.msk.f32.gmra.mxu0 %vm731_vm8, %v1499_v57  ;;  %1575 = vmatmul.msk.f32.gmra.mxu2 %vm731_vm8, %v1524_v49 }
 0x179   :  { %1631 = vmatmul.msk.f32.gmra.mxu3 %vm1053_vm1, %v1479_v50  ;;  %vm620_vm1 = vcmp.eq.s32.totalorder %v564_v51, %v1832_v55 }
 0x17a   :  { %v1526_v13 = vsel %vm620_vm1, 1.0, %v1650_v59 }
 0x17b   :  { %v987_v36 = vpop.f32.mrf.mxu2 }
 0x17c   :  { %v1310_v32 = vadd.f32 %v2360_v1, %v987_v36 }
 0x17d   :  { %v915_v62 = vpop.f32.mrf.mxu0 }
 0x17e   :  { %1404 = vst.msk [vmem:[%s2710_s4 + $0xe0] sm:$0xff] %vm1375_vm13, %v1310_v32  ;;  %v1238_v0 = vadd.f32 %v2248_v61, %v915_v62  ;;  %v2465_v2 = vpop.f32.mrf.mxu1  ;;  %v567_v4 = vpop.permute.xlu2 %566 }
 0x17f   :  { %v492_v61 = vpop.permute.xlu0 %491  ;;  %v1324_v8 = vpop.f32.mrf.mxu3  ;;  %vm621_vm14 = vcmp.eq.s32.totalorder %v567_v4, %v1832_v55 }
 0x180   :  { %1380 = vst.msk [vmem:[%s2710_s4 + $0x20] sm:$0xff] %vm1375_vm13, %v1238_v0  ;;  %1551 = vmatmul.msk.f32.gmra.mxu0 %vm731_vm8, %v1500_v3  ;;  %1576 = vmatmul.msk.f32.gmra.mxu2 %vm731_vm8, %v1525_v14  ;;  %vm596_vm15 = vcmp.eq.s32.totalorder %v492_v61, %v1832_v55  ;;  %v1527_v26 = vsel %vm621_vm14, 1.0, %v1650_v59 }
 0x181   :  { %v1502_v21 = vsel %vm596_vm15, 1.0, %v1650_v59 }
 0x183   :  { %v990_v1 = vpop.f32.mrf.mxu2 }
 0x184   :  { %v1313_v5 = vadd.f32 %v2375_v6, %v990_v1 }
 0x185   :  { %v918_v43 = vpop.f32.mrf.mxu0 }
 0x186   :  { %1405 = vst.msk [vmem:[%s2710_s4 + $0xe8] sm:$0xff] %vm1375_vm13, %v1313_v5  ;;  %v1241_v10 = vadd.f32 %v2264_v25, %v918_v43  ;;  %v2483_v12 = vpop.f32.mrf.mxu1  ;;  %v570_v18 = vpop.permute.xlu2 %569 }
 0x187   :  { %v495_v20 = vpop.permute.xlu0 %494  ;;  %v1327_v31 = vpop.f32.mrf.mxu3  ;;  %vm622_vm0 = vcmp.eq.s32.totalorder %v570_v18, %v1832_v55 }
 0x188   :  { %1381 = vst.msk [vmem:[%s2710_s4 + $0x28] sm:$0xff] %vm1375_vm13, %v1241_v10  ;;  %1552 = vmatmul.msk.f32.gmra.mxu0 %vm731_vm8, %v1501_v17  ;;  %1577 = vmatmul.msk.f32.gmra.mxu2 %vm731_vm8, %v1526_v13  ;;  %vm597_vm2 = vcmp.eq.s32.totalorder %v495_v20, %v1832_v55  ;;  %v1528_v38 = vsel %vm622_vm0, 1.0, %v1650_v59 }
 0x189   :  { %v1503_v53 = vsel %vm597_vm2, 1.0, %v1650_v59 }
 0x18b   :  { %v993_v6 = vpop.f32.mrf.mxu2 }
 0x18c   :  { %v1316_v25 = vadd.f32 %v2401_v27, %v993_v6 }
 0x18d   :  { %v921_v42 = vpop.f32.mrf.mxu0 }
 0x18e   :  { %1406 = vst.msk [vmem:[%s2710_s4 + $0xf0] sm:$0xff] %vm1375_vm13, %v1316_v25  ;;  %v1244_v19 = vadd.f32 %v2276_v9, %v921_v42  ;;  %v2501_v24 = vpop.f32.mrf.mxu1  ;;  %v573_v7 = vpop.permute.xlu2 %572 }
 0x18f   :  { %v498_v11 = vpop.permute.xlu0 %497  ;;  %v1330_v40 = vpop.f32.mrf.mxu3  ;;  %vm623_vm3 = vcmp.eq.s32.totalorder %v573_v7, %v1832_v55 }
 0x190   :  { %1382 = vst.msk [vmem:[%s2710_s4 + $0x30] sm:$0xff] %vm1375_vm13, %v1244_v19  ;;  %1553 = vmatmul.msk.f32.gmra.mxu0 %vm731_vm8, %v1502_v21  ;;  %1578 = vmatmul.msk.f32.gmra.mxu2 %vm731_vm8, %v1527_v26  ;;  %vm598_vm4 = vcmp.eq.s32.totalorder %v498_v11, %v1832_v55  ;;  %v1529_v52 = vsel %vm623_vm3, 1.0, %v1650_v59 }
 0x191   :  { %v1504_v48 = vsel %vm598_vm4, 1.0, %v1650_v59 }
 0x193   :  { %v996_v27 = vpop.f32.mrf.mxu2 }
 0x194   :  { %v1319_v9 = vadd.f32 %v2431_v44, %v996_v27 }
 0x195   :  { %v924_v56 = vpop.f32.mrf.mxu0 }
 0x196   :  { %1407 = vst.msk [vmem:[%s2710_s4 + $0xf8] sm:$0xff] %vm1375_vm13, %v1319_v9  ;;  %v1247_v34 = vadd.f32 %v2291_v15, %v924_v56  ;;  %v2519_v35 = vpop.f32.mrf.mxu1 }
 0x197   :  { %v1333_v55 = vpop.f32.mrf.mxu3 }
 0x198   :  { %1383 = vst.msk [vmem:[%s2710_s4 + $0x38] sm:$0xff] %vm1375_vm13, %v1247_v34  ;;  %1554 = vmatmul.msk.f32.gmra.mxu0 %vm731_vm8, %v1503_v53  ;;  %1579 = vmatmul.msk.f32.gmra.mxu2 %vm731_vm8, %v1528_v38 }
 0x19b   :  { %v999_v41 = vpop.f32.mrf.mxu2 }
 0x19c   :  { %v1322_v15 = vadd.f32 %v2455_v60, %v999_v41 }
 0x19d   :  { %v927_v45 = vpop.f32.mrf.mxu0 }
 0x19e   :  { %1408 = vst.msk [vmem:[%s2710_s4 + $0x100] sm:$0xff] %vm1375_vm13, %v1322_v15  ;;  %v1250_v44 = vadd.f32 %v2307_v28, %v927_v45  ;;  %v2537_v46 = vpop.f32.mrf.mxu1 }
 0x19f   :  { %v1336_v51 = vpop.f32.mrf.mxu3 }
 0x1a0   :  { %1384 = vst.msk [vmem:[%s2710_s4 + $0x40] sm:$0xff] %vm1375_vm13, %v1250_v44  ;;  %1555 = vmatmul.msk.f32.gmra.mxu0 %vm731_vm8, %v1504_v48  ;;  %1580 = vmatmul.msk.f32.gmra.mxu2 %vm731_vm8, %v1529_v52 }
 0x1a3   :  { %v1002_v22 = vpop.f32.mrf.mxu2 }
 0x1a4   :  { %v1325_v37 = vadd.f32 %v1324_v8, %v1002_v22 }
 0x1a5   :  { %v930_v49 = vpop.f32.mrf.mxu0 }
 0x1a6   :  { %1409 = vst.msk [vmem:[%s2710_s4 + $0x108] sm:$0xff] %vm1375_vm13, %v1325_v37  ;;  %v1253_v59 = vadd.f32 %v2323_v23, %v930_v49  ;;  %v2552_v28 = vpop.f32.mrf.mxu1 }
 0x1a8   :  { %1385 = vst.msk [vmem:[%s2710_s4 + $0x48] sm:$0xff] %vm1375_vm13, %v1253_v59 }
 0x1ab   :  { %v1005_v57 = vpop.f32.mrf.mxu2 }
 0x1ac   :  { %v1328_v50 = vadd.f32 %v1327_v31, %v1005_v57 }
 0x1ad   :  { %v933_v54 = vpop.f32.mrf.mxu0 }
 0x1ae   :  { %1410 = vst.msk [vmem:[%s2710_s4 + $0x110] sm:$0xff] %vm1375_vm13, %v1328_v50  ;;  %v1256_v60 = vadd.f32 %v2338_v47, %v933_v54  ;;  %v2563_v36 = vpop.f32.mrf.mxu1  ;;  %v1339_v47 = vpop.f32.mrf.mxu3 }
 0x1b0   :  { %1386 = vst.msk [vmem:[%s2710_s4 + $0x50] sm:$0xff] %vm1375_vm13, %v1256_v60 }
 0x1b3   :  { %v1008_v23 = vpop.f32.mrf.mxu2 }
 0x1b4   :  { %v1331_v32 = vadd.f32 %v1330_v40, %v1008_v23 }
 0x1b5   :  { %v936_v62 = vpop.f32.mrf.mxu0 }
 0x1b6   :  { %1411 = vst.msk [vmem:[%s2710_s4 + $0x118] sm:$0xff] %vm1375_vm13, %v1331_v32  ;;  %v1259_v0 = vadd.f32 %v2351_v58, %v936_v62  ;;  %v2574_v14 = vpop.f32.mrf.mxu1  ;;  %v1342_v58 = vpop.f32.mrf.mxu3 }
 0x1b8   :  { %1387 = vst.msk [vmem:[%s2710_s4 + $0x58] sm:$0xff] %vm1375_vm13, %v1259_v0 }
 0x1bb   :  { %v1011_v3 = vpop.f32.mrf.mxu2 }
 0x1bc   :  { %v1334_v1 = vadd.f32 %v1333_v55, %v1011_v3 }
 0x1bd   :  { %v939_v4 = vpop.f32.mrf.mxu0 }
 0x1be   :  { %1412 = vst.msk [vmem:[%s2710_s4 + $0x120] sm:$0xff] %vm1375_vm13, %v1334_v1  ;;  %v1262_v61 = vadd.f32 %v2364_v63, %v939_v4  ;;  %v1300_v5 = vpop.f32.mrf.mxu1 }
 0x1bf   :  { %v1301_v8 = vadd.f32 %v1300_v5, %v2391_v16  ;;  %v1345_v16 = vpop.f32.mrf.mxu3 }
 0x1c0   :  { %1388 = vst.msk [vmem:[%s2710_s4 + $0x60] sm:$0xff] %vm1375_vm13, %v1262_v61 }
 0x1c1   :  { %1401 = vst.msk [vmem:[%s2710_s4 + $0xc8] sm:$0xff] %vm1375_vm13, %v1301_v8 }
 0x1c3   :  { %v1014_v43 = vpop.f32.mrf.mxu2 }
 0x1c4   :  { %v1337_v10 = vadd.f32 %v1336_v51, %v1014_v43 }
 0x1c5   :  { %v942_v13 = vpop.f32.mrf.mxu0 }
 0x1c6   :  { %1413 = vst.msk [vmem:[%s2710_s4 + $0x128] sm:$0xff] %vm1375_vm13, %v1337_v10  ;;  %v1265_v63 = vadd.f32 %v2379_v30, %v942_v13 }
 0x1c7   :  { %v1348_v30 = vpop.f32.mrf.mxu3 }
 0x1c8   :  { %1389 = vst.msk [vmem:[%s2710_s4 + $0x68] sm:$0xff] %vm1375_vm13, %v1265_v63 }
 0x1cb   :  { %v1017_v17 = vpop.f32.mrf.mxu2 }
 0x1cc   :  { %v1340_v6 = vadd.f32 %v1339_v47, %v1017_v17 }
 0x1cd   :  { %v945_v25 = vpop.f32.mrf.mxu0 }
 0x1ce   :  { %1414 = vst.msk [vmem:[%s2710_s4 + $0x130] sm:$0xff] %vm1375_vm13, %v1340_v6  ;;  %v1268_v42 = vadd.f32 %v2397_v29, %v945_v25 }
 0x1cf   :  { %v1351_v31 = vpop.f32.mrf.mxu3 }
 0x1d0   :  { %1390 = vst.msk [vmem:[%s2710_s4 + $0x70] sm:$0xff] %vm1375_vm13, %v1268_v42 }
 0x1d3   :  { %v1020_v18 = vpop.f32.mrf.mxu2 }
 0x1d4   :  { %v1343_v19 = vadd.f32 %v1342_v58, %v1020_v18 }
 0x1d5   :  { %v948_v26 = vpop.f32.mrf.mxu0 }
 0x1d6   :  { %1415 = vst.msk [vmem:[%s2710_s4 + $0x138] sm:$0xff] %vm1375_vm13, %v1343_v19  ;;  %v1271_v21 = vadd.f32 %v2420_v39, %v948_v26 }
 0x1d7   :  { %v1354_v53 = vpop.f32.mrf.mxu3 }
 0x1d8   :  { %1391 = vst.msk [vmem:[%s2710_s4 + $0x78] sm:$0xff] %vm1375_vm13, %v1271_v21 }
 0x1db   :  { %v1023_v29 = vpop.f32.mrf.mxu2 }
 0x1dc   :  { %v1346_v20 = vadd.f32 %v1345_v16, %v1023_v29 }
 0x1dd   :  { %v951_v27 = vpop.f32.mrf.mxu0 }
 0x1de   :  { %1416 = vst.msk [vmem:[%s2710_s4 + $0x140] sm:$0xff] %vm1375_vm13, %v1346_v20  ;;  %v1274_v9 = vadd.f32 %v2443_v33, %v951_v27 }
 0x1e0   :  { %1392 = vst.msk [vmem:[%s2710_s4 + $0x80] sm:$0xff] %vm1375_vm13, %v1274_v9 }
 0x1e3   :  { %v1026_v39 = vpop.f32.mrf.mxu2 }
 0x1e4   :  { %v1349_v56 = vadd.f32 %v1348_v30, %v1026_v39 }
 0x1e5   :  { %v954_v34 = vpop.f32.mrf.mxu0 }
 0x1e6   :  { %1417 = vst.msk [vmem:[%s2710_s4 + $0x148] sm:$0xff] %vm1375_vm13, %v1349_v56  ;;  %v1277_v38 = vadd.f32 %v2465_v2, %v954_v34  ;;  %v1357_v2 = vpop.f32.mrf.mxu3 }
 0x1e8   :  { %1393 = vst.msk [vmem:[%s2710_s4 + $0x88] sm:$0xff] %vm1375_vm13, %v1277_v38 }
 0x1eb   :  { %v1029_v33 = vpop.f32.mrf.mxu2 }
 0x1ec   :  { %v1352_v7 = vadd.f32 %v1351_v31, %v1029_v33 }
 0x1ed   :  { %v957_v11 = vpop.f32.mrf.mxu0 }
 0x1ee   :  { %1418 = vst.msk [vmem:[%s2710_s4 + $0x150] sm:$0xff] %vm1375_vm13, %v1352_v7  ;;  %v1280_v40 = vadd.f32 %v2483_v12, %v957_v11  ;;  %v1360_v12 = vpop.f32.mrf.mxu3 }
 0x1f0   :  { %1394 = vst.msk [vmem:[%s2710_s4 + $0x90] sm:$0xff] %vm1375_vm13, %v1280_v40 }
 0x1f3   :  { %v1032_v41 = vpop.f32.mrf.mxu2 }
 0x1f4   :  { %v1355_v15 = vadd.f32 %v1354_v53, %v1032_v41 }
 0x1f5   :  { %v960_v45 = vpop.f32.mrf.mxu0 }
 0x1f6   :  { %1419 = vst.msk [vmem:[%s2710_s4 + $0x158] sm:$0xff] %vm1375_vm13, %v1355_v15  ;;  %v1283_v44 = vadd.f32 %v2501_v24, %v960_v45  ;;  %v1363_v49 = vpop.f32.mrf.mxu3 }
 0x1f8   :  { %1395 = vst.msk [vmem:[%s2710_s4 + $0x98] sm:$0xff] %vm1375_vm13, %v1283_v44 }
 0x1fb   :  { %v1035_v52 = vpop.f32.mrf.mxu2 }
 0x1fc   :  { %v1358_v48 = vadd.f32 %v1357_v2, %v1035_v52 }
 0x1fd   :  { %v963_v55 = vpop.f32.mrf.mxu0 }
 0x1fe   :  { %1420 = vst.msk [vmem:[%s2710_s4 + $0x160] sm:$0xff] %vm1375_vm13, %v1358_v48  ;;  %v1286_v22 = vadd.f32 %v2519_v35, %v963_v55  ;;  %v1366_v60 = vpop.f32.mrf.mxu3 }
 0x200   :  { %1396 = vst.msk [vmem:[%s2710_s4 + $0xa0] sm:$0xff] %vm1375_vm13, %v1286_v22 }
 0x203   :  { %v1038_v24 = vpop.f32.mrf.mxu2 }
 0x204   :  { %v1361_v37 = vadd.f32 %v1360_v12, %v1038_v24 }
 0x205   :  { %v966_v59 = vpop.f32.mrf.mxu0 }
 0x206   :  { %1421 = vst.msk [vmem:[%s2710_s4 + $0x168] sm:$0xff] %vm1375_vm13, %v1361_v37  ;;  %v1289_v57 = vadd.f32 %v2537_v46, %v966_v59 }
 0x208   :  { %1397 = vst.msk [vmem:[%s2710_s4 + $0xa8] sm:$0xff] %vm1375_vm13, %v1289_v57 }
 0x20b   :  { %v1041_v35 = vpop.f32.mrf.mxu2 }
 0x20c   :  { %v1364_v50 = vadd.f32 %v1363_v49, %v1041_v35 }
 0x20d   :  { %v969_v51 = vpop.f32.mrf.mxu0 }
 0x20e   :  { %1422 = vst.msk [vmem:[%s2710_s4 + $0x170] sm:$0xff] %vm1375_vm13, %v1364_v50  ;;  %v1292_v54 = vadd.f32 %v2552_v28, %v969_v51  ;;  %v1369_v28 = vpop.f32.mrf.mxu3 }
 0x210   :  { %1398 = vst.msk [vmem:[%s2710_s4 + $0xb0] sm:$0xff] %vm1375_vm13, %v1292_v54 }
 0x213   :  { %v1044_v46 = vpop.f32.mrf.mxu2 }
 0x214   :  { %v1367_v23 = vadd.f32 %v1366_v60, %v1044_v46 }
 0x215   :  { %v972_v32 = vpop.f32.mrf.mxu0 }
 0x216   :  { %1423 = vst.msk [vmem:[%s2710_s4 + $0x178] sm:$0xff] %vm1375_vm13, %v1367_v23  ;;  %v1295_v62 = vadd.f32 %v2563_v36, %v972_v32  ;;  %v1372_v36 = vpop.f32.mrf.mxu3 }
 0x218   :  { %1399 = vst.msk [vmem:[%s2710_s4 + $0xb8] sm:$0xff] %vm1375_vm13, %v1295_v62 }
 0x21b   :  { %v1047_v0 = vpop.f32.mrf.mxu2 }
 0x21c   :  { %v1370_v47 = vadd.f32 %v1369_v28, %v1047_v0 }
 0x21d   :  { %v975_v3 = vpop.f32.mrf.mxu0 }
 0x21e   :  { %1424 = vst.msk [vmem:[%s2710_s4 + $0x180] sm:$0xff] %vm1375_vm13, %v1370_v47  ;;  %v1298_v1 = vadd.f32 %v2574_v14, %v975_v3 }
 0x220   :  { %1400 = vst.msk [vmem:[%s2710_s4 + $0xc0] sm:$0xff] %vm1375_vm13, %v1298_v1 }
 0x223   :  { %v1050_v4 = vpop.f32.mrf.mxu2 }
 0x224   :  { %v1373_v61 = vadd.f32 %v1372_v36, %v1050_v4 }
 0x226   :  { %1425 = vst.msk [vmem:[%s2710_s4 + $0x188] sm:$0xff] %vm1375_vm13, %v1373_v61 }

</bundles_post_ra>
